<compile_context>
chip_gen: v5e
topology: v5e:2x2
jax: 0.10.0
libtpu: 0.0.40
codegen_flags: <defaults>
</compile_context>

<pallas_src>
import jax
import jax.numpy as jnp
from jax import lax
from jax.experimental import pallas as pl
from jax.experimental.pallas import tpu as pltpu

_BN_EPS = 1e-5


def _mish(y):
    """Mish(y) = y * tanh(softplus(y)), single-exp form.

    tanh(log1p(t)) = t*(t+2) / (t*(t+2) + 2) with t = exp(y); keeps PyTorch's
    softplus threshold-20 branch (tanh(y > 20) == 1 in f32)."""
    t = jnp.exp(jnp.minimum(y, 20.0))
    r = t * (t + 2.0)
    return jnp.where(y > 20.0, y, y * (r / (r + 2.0)))


def _conv_pre(xb, w_cat):
    """Bias-free ConvTranspose1d(k=3, s=2, p=1) for one batch element, fully interleaved.

    xb    : (Cin, L)        input in NCL layout (length on lanes)
    w_cat : (3*Cout, Cin)   stacked taps [W[:,:,0]^T; W[:,:,1]^T; W[:,:,2]^T]
    returns (Cout, 2L-1)    pre-BatchNorm conv output at final output positions.

    Positions: out[:, 2m] = x[m].W1 ; out[:, 2m+1] = x[m].W2 + x[m+1].W0.
    Each tap stream is scattered to its output lanes with a 0/1 spreading matrix on the
    MXU; out-of-range contributions (tap0 at i=0, tap2 at i=L-1) simply have no column,
    so no masks and no lane shifts are needed.
    """
    C = w_cat.shape[0] // 3
    L = xb.shape[1]
    Lout = 2 * L - 1

    taps = jnp.dot(w_cat, xb, preferred_element_type=jnp.float32)        # (3C, L)
    tap0, tap1, tap2 = taps[:C], taps[C:2 * C], taps[2 * C:]

    i_idx = lax.broadcasted_iota(jnp.int32, (L, Lout), 0)
    t_idx = lax.broadcasted_iota(jnp.int32, (L, Lout), 1)
    spread_even = (t_idx == 2 * i_idx).astype(jnp.float32)               # tap1[:, i] -> t = 2i
    spread_odd = (t_idx == 2 * i_idx + 1).astype(jnp.float32)            # tap2[:, i] -> t = 2i+1
    spread_prev = (t_idx == 2 * i_idx - 1).astype(jnp.float32)           # tap0[:, i] -> t = 2i-1

    # TODO(synk): the spreading matmuls are O(Cout*L^2) MACs; fine for the short horizons
    # this decoder uses (L <= a few hundred), revisit (roll/strided DMA) for very long L.
    return (jnp.dot(tap1, spread_even, preferred_element_type=jnp.float32)
            + jnp.dot(tap2, spread_odd, preferred_element_type=jnp.float32)
            + jnp.dot(tap0, spread_prev, preferred_element_type=jnp.float32))


def _conv_stats_kernel(x_ref, w_ref, stats_ref):
    """Pass 1 (one program per batch element): conv + BatchNorm partial sums only.

    x_ref    : (1, Cin, L)
    w_ref    : (3*Cout, Cin)
    stats_ref: (1, 2*Cout, 1)  rows [:C] = per-channel sum, rows [C:] = per-channel sum sq
    """
    y = _conv_pre(x_ref[0], w_ref[...])                                  # (C, Lout)
    s = jnp.sum(y, axis=1, keepdims=True)
    ss = jnp.sum(y * y, axis=1, keepdims=True)
    stats_ref[0] = jnp.concatenate([s, ss], axis=0)                      # (2C, 1)


def _fused_out_kernel(x_ref, cond_ref, w_ref, wc_ref, pp_ref, stats_ref, o_ref):
    """Pass 2 (one program per batch element): conv recompute + BN + Mish + FiLM.

    x_ref    : (1, Cin, L)
    cond_ref : (1, cond_dim, 1)     conditioning vector as a column
    w_ref    : (3*Cout, Cin)
    wc_ref   : (2*Cout, cond_dim)   FiLM Linear weight (PyTorch (out, in) layout)
    pp_ref   : (2, 2*Cout, 1)       packed params: [FiLM bias ; concat(bn_gamma, bn_beta)]
    stats_ref: (B, 2*Cout, 1)       per-batch partial sums from pass 1 (resident, loaded once)
    o_ref    : (1, Cout, 2L-1)      final output block
    """
    C = o_ref.shape[1]
    Lout = o_ref.shape[2]
    n = float(stats_ref.shape[0] * Lout)                                 # B * Lout (static)

    y = _conv_pre(x_ref[0], w_ref[...])                                  # (C, Lout)

    # BatchNorm finalize from the global batch statistics (O(C) per program; redundant
    # across programs but trivial, and it removes the wrapper op between the two passes).
    tot = jnp.sum(stats_ref[...], axis=0)                                # (2C, 1)
    mean = tot[:C] * (1.0 / n)
    var = tot[C:] * (1.0 / n) - mean * mean                              # biased, like PyTorch BN
    gb = pp_ref[1]                                                       # (2C,1): [gamma; beta]
    inv = gb[:C] * lax.rsqrt(var + _BN_EPS)
    shift = gb[C:] - mean * inv

    # FiLM: one matvec for both halves, Mish, split into (scale, bias).
    h = _mish(jnp.dot(wc_ref[...], cond_ref[0],
                      preferred_element_type=jnp.float32) + pp_ref[0])   # (2C, 1)
    scale, fbias = h[:C], h[C:]

    a = _mish(y * inv + shift)                                           # BN + Mish
    o_ref[0] = a * scale + fbias                                         # FiLM modulation


@jax.jit
def conditional_conv1d_block(x, cond, params):
    """x: (B, Cin, L) NCL float32, cond: (B, cond_dim). Returns (B, Cout, 2L-1)."""
    B, Cin, L = x.shape
    cond_dim = cond.shape[1]
    wconv = params["w_conv"]                        # (Cin, Cout, 3) ConvTranspose1d layout
    Cout = wconv.shape[1]
    Lout = 2 * L - 1

    x32 = x.astype(jnp.float32)
    # Stacked, transposed conv taps: rows [k=0; k=1; k=2], each (Cout, Cin).
    w_cat = jnp.concatenate(
        [wconv[:, :, 0].T, wconv[:, :, 1].T, wconv[:, :, 2].T], axis=0
    ).astype(jnp.float32)                           # (3*Cout, Cin)
    # params["b_conv"] is deliberately unused: a per-channel constant added right before a
    # training-stats BatchNorm cancels exactly (mean subtraction; variance shift-invariant).

    wc = params["w_cond"].astype(jnp.float32).T     # (2*Cout, cond_dim)
    bc = params["b_cond"].astype(jnp.float32).reshape(2 * Cout, 1)
    gb = jnp.concatenate([params["bn_gamma"], params["bn_beta"]]).astype(
        jnp.float32).reshape(2 * Cout, 1)
    packed = jnp.stack([bc, gb], axis=0)            # (2, 2*Cout, 1): one small resident DMA
    cond_col = cond.astype(jnp.float32).reshape(B, cond_dim, 1)

    cparams = pltpu.CompilerParams(
        dimension_semantics=("parallel",),          # batch programs independent (megacore on v7x)
        vmem_limit_bytes=32 * 1024 * 1024,          # per-batch blocks are tiny; safe everywhere
    )

    # ---- pass 1: conv + per-batch BatchNorm partial sums (no conv output to HBM) ----
    stats = pl.pallas_call(
        _conv_stats_kernel,
        grid=(B,),
        in_specs=[pl.BlockSpec((1, Cin, L), lambda b: (b, 0, 0)),
                  pl.BlockSpec((3 * Cout, Cin), lambda b: (0, 0))],
        out_specs=pl.BlockSpec((1, 2 * Cout, 1), lambda b: (b, 0, 0)),
        out_shape=jax.ShapeDtypeStruct((B, 2 * Cout, 1), jnp.float32),
        compiler_params=cparams,
    )(x32, w_cat)

    # ---- pass 2: conv recompute + BN finalize + normalize + Mish + FiLM -> final output ----
    y = pl.pallas_call(
        _fused_out_kernel,
        grid=(B,),
        in_specs=[pl.BlockSpec((1, Cin, L), lambda b: (b, 0, 0)),
                  pl.BlockSpec((1, cond_dim, 1), lambda b: (b, 0, 0)),
                  pl.BlockSpec((3 * Cout, Cin), lambda b: (0, 0)),
                  pl.BlockSpec((2 * Cout, cond_dim), lambda b: (0, 0)),
                  pl.BlockSpec((2, 2 * Cout, 1), lambda b: (0, 0, 0)),
                  pl.BlockSpec((B, 2 * Cout, 1), lambda b: (0, 0, 0))],
        out_specs=pl.BlockSpec((1, Cout, Lout), lambda b: (b, 0, 0)),
        out_shape=jax.ShapeDtypeStruct((B, Cout, Lout), jnp.float32),
        compiler_params=cparams,
    )(x32, cond_col, w_cat, wc, packed, stats)

    return y


# ----------------------------- pure-JAX reference ---------------------------------------
def _mish_ref(y):
    sp = jnp.where(y > 20.0, y, jnp.log1p(jnp.exp(jnp.minimum(y, 20.0))))
    return y * jnp.tanh(sp)


def _reference(x, cond, params):
    """Pure-JAX reference mirroring the PyTorch forward (training-mode BN)."""
    wconv = params["w_conv"]
    Cin, Cout, K = wconv.shape
    B, _, L = x.shape
    Lout = 2 * L - 1
    y = jnp.zeros((B, Cout, Lout), jnp.float32)
    for k in range(K):
        for i in range(L):
            t = 2 * i - 1 + k                     # t = i*stride - padding + k
            if 0 <= t < Lout:
                y = y.at[:, :, t].add(x[:, :, i] @ wconv[:, :, k])
    y = y + params["b_conv"][None, :, None]
    mean = y.mean(axis=(0, 2), keepdims=True)
    var = y.var(axis=(0, 2), keepdims=True)       # biased, like PyTorch BN normalization
    y = (y - mean) / jnp.sqrt(var + _BN_EPS)
    y = y * params["bn_gamma"][None, :, None] + params["bn_beta"][None, :, None]
    y = _mish_ref(y)
    h = _mish_ref(cond @ params["w_cond"] + params["b_cond"])
    scale = h[:, :Cout][:, :, None]
    fb = h[:, Cout:][:, :, None]
    return y * scale + fb


if __name__ == "__main__":
    B, Cin, Cout, L, cond_dim = 2, 4, 8, 16, 64
    key = jax.random.PRNGKey(0)
    ks = jax.random.split(key, 8)
    params = {
        "w_conv": jax.random.normal(ks[0], (Cin, Cout, 3), jnp.float32) * 0.3,
        "b_conv": jax.random.normal(ks[1], (Cout,), jnp.float32) * 0.1,
        "bn_gamma": 1.0 + 0.1 * jax.random.normal(ks[2], (Cout,), jnp.float32),
        "bn_beta": 0.1 * jax.random.normal(ks[3], (Cout,), jnp.float32),
        "w_cond": jax.random.normal(ks[4], (cond_dim, 2 * Cout), jnp.float32) * 0.1,
        "b_cond": jax.random.normal(ks[5], (2 * Cout,), jnp.float32) * 0.1,
    }
    x = jax.random.normal(ks[6], (B, Cin, L), jnp.float32)
    cond = jax.random.normal(ks[7], (B, cond_dim), jnp.float32)

    out = jax.block_until_ready(conditional_conv1d_block(x, cond, params))
    ref = jax.block_until_ready(_reference(x, cond, params))

    assert out.shape == (B, Cout, 2 * L - 1), out.shape
    assert jnp.allclose(out, ref, atol=1e-4, rtol=1e-4), float(jnp.max(jnp.abs(out - ref)))
    print("KERNEL_OK")
</pallas_src>

<mosaic_0001>
module attributes {stable_mosaic.version = 11 : i64} {
  func.func @_fused_out_kernel(%arg0: i32, %arg1: memref<1x4x16xf32, #tpu.memory_space<vmem>>, %arg2: memref<1x64x1xf32, #tpu.memory_space<vmem>>, %arg3: memref<24x4xf32, #tpu.memory_space<vmem>>, %arg4: memref<16x64xf32, #tpu.memory_space<vmem>>, %arg5: memref<2x16x1xf32, #tpu.memory_space<vmem>>, %arg6: memref<2x16x1xf32, #tpu.memory_space<vmem>>, %arg7: memref<1x8x31xf32, #tpu.memory_space<vmem>>) attributes {dimension_semantics = [#tpu.dimension_semantics<parallel>], iteration_bounds = array<i64: 2>, scalar_prefetch = 0 : i64, scratch_operands = 0 : i64, tpu.core_type = #tpu.core_type<tc>, window_params = [{transform_indices = @transform_0, window_bounds = array<i64: 1, 4, 16>}, {transform_indices = @transform_1, window_bounds = array<i64: 1, 64, 1>}, {pipeline_mode = #tpu.pipeline_mode<synchronous>, transform_indices = @transform_2, window_bounds = array<i64: 24, 4>}, {pipeline_mode = #tpu.pipeline_mode<synchronous>, transform_indices = @transform_3, window_bounds = array<i64: 16, 64>}, {pipeline_mode = #tpu.pipeline_mode<synchronous>, transform_indices = @transform_4, window_bounds = array<i64: 2, 16, 1>}, {pipeline_mode = #tpu.pipeline_mode<synchronous>, transform_indices = @transform_5, window_bounds = array<i64: 2, 16, 1>}, {transform_indices = @transform_6, window_bounds = array<i64: 1, 8, 31>}]} {
    %c0 = arith.constant 0 : index
    %c0_0 = arith.constant 0 : index
    %c0_1 = arith.constant 0 : index
    %0 = vector.load %arg1[%c0, %c0_0, %c0_1] : memref<1x4x16xf32, #tpu.memory_space<vmem>>, vector<1x4x16xf32>
    %1 = vector.shape_cast %0 : vector<1x4x16xf32> to vector<4x16xf32>
    %c0_2 = arith.constant 0 : index
    %c0_3 = arith.constant 0 : index
    %2 = vector.load %arg3[%c0_2, %c0_3] : memref<24x4xf32, #tpu.memory_space<vmem>>, vector<24x4xf32>
    %cst = arith.constant dense<0.000000e+00> : vector<24x16xf32>
    %3 = tpu.matmul %2, %1, %cst {dimension_numbers = #tpu.dot_dimension_numbers<[1], [0], [0], [1], [0, 0, 1, 1], [], []>} : vector<24x4xf32>, vector<4x16xf32>, vector<24x16xf32> -> vector<24x16xf32>
    %4 = vector.extract_strided_slice %3 {offsets = [0, 0], sizes = [8, 16], strides = [1, 1]} : vector<24x16xf32> to vector<8x16xf32>
    %5 = vector.extract_strided_slice %3 {offsets = [8, 0], sizes = [8, 16], strides = [1, 1]} : vector<24x16xf32> to vector<8x16xf32>
    %6 = vector.extract_strided_slice %3 {offsets = [16, 0], sizes = [8, 16], strides = [1, 1]} : vector<24x16xf32> to vector<8x16xf32>
    %7 = tpu.iota {dimensions = array<i32: 0>} : vector<16x31xi32>
    %8 = tpu.iota {dimensions = array<i32: 1>} : vector<16x31xi32>
    %c2_i32 = arith.constant 2 : i32
    %9 = vector.broadcast %c2_i32 : i32 to vector<16x31xi32>
    %10 = arith.muli %9, %7 : vector<16x31xi32>
    %11 = arith.cmpi eq, %8, %10 : vector<16x31xi32>
    %12 = arith.extui %11 : vector<16x31xi1> to vector<16x31xi32>
    %13 = arith.sitofp %12 : vector<16x31xi32> to vector<16x31xf32>
    %c2_i32_4 = arith.constant 2 : i32
    %14 = vector.broadcast %c2_i32_4 : i32 to vector<16x31xi32>
    %15 = arith.muli %14, %7 : vector<16x31xi32>
    %c1_i32 = arith.constant 1 : i32
    %16 = vector.broadcast %c1_i32 : i32 to vector<16x31xi32>
    %17 = arith.addi %15, %16 : vector<16x31xi32>
    %18 = arith.cmpi eq, %8, %17 : vector<16x31xi32>
    %19 = arith.extui %18 : vector<16x31xi1> to vector<16x31xi32>
    %20 = arith.sitofp %19 : vector<16x31xi32> to vector<16x31xf32>
    %c2_i32_5 = arith.constant 2 : i32
    %21 = vector.broadcast %c2_i32_5 : i32 to vector<16x31xi32>
    %22 = arith.muli %21, %7 : vector<16x31xi32>
    %c1_i32_6 = arith.constant 1 : i32
    %23 = vector.broadcast %c1_i32_6 : i32 to vector<16x31xi32>
    %24 = arith.subi %22, %23 : vector<16x31xi32>
    %25 = arith.cmpi eq, %8, %24 : vector<16x31xi32>
    %26 = arith.extui %25 : vector<16x31xi1> to vector<16x31xi32>
    %27 = arith.sitofp %26 : vector<16x31xi32> to vector<16x31xf32>
    %cst_7 = arith.constant dense<0.000000e+00> : vector<8x31xf32>
    %28 = tpu.matmul %5, %13, %cst_7 {dimension_numbers = #tpu.dot_dimension_numbers<[1], [0], [0], [1], [0, 0, 1, 1], [], []>} : vector<8x16xf32>, vector<16x31xf32>, vector<8x31xf32> -> vector<8x31xf32>
    %cst_8 = arith.constant dense<0.000000e+00> : vector<8x31xf32>
    %29 = tpu.matmul %6, %20, %cst_8 {dimension_numbers = #tpu.dot_dimension_numbers<[1], [0], [0], [1], [0, 0, 1, 1], [], []>} : vector<8x16xf32>, vector<16x31xf32>, vector<8x31xf32> -> vector<8x31xf32>
    %30 = arith.addf %28, %29 : vector<8x31xf32>
    %cst_9 = arith.constant dense<0.000000e+00> : vector<8x31xf32>
    %31 = tpu.matmul %4, %27, %cst_9 {dimension_numbers = #tpu.dot_dimension_numbers<[1], [0], [0], [1], [0, 0, 1, 1], [], []>} : vector<8x16xf32>, vector<16x31xf32>, vector<8x31xf32> -> vector<8x31xf32>
    %32 = arith.addf %30, %31 : vector<8x31xf32>
    %c0_10 = arith.constant 0 : index
    %c0_11 = arith.constant 0 : index
    %c0_12 = arith.constant 0 : index
    %33 = vector.load %arg6[%c0_10, %c0_11, %c0_12] : memref<2x16x1xf32, #tpu.memory_space<vmem>>, vector<2x16x1xf32>
    %cst_13 = arith.constant dense<0.000000e+00> : vector<16x1xf32>
    %34 = vector.multi_reduction <add>, %33, %cst_13 [0] : vector<2x16x1xf32> to vector<16x1xf32>
    %35 = vector.extract_strided_slice %34 {offsets = [0, 0], sizes = [8, 1], strides = [1, 1]} : vector<16x1xf32> to vector<8x1xf32>
    %cst_14 = arith.constant 0.0161290318 : f32
    %36 = vector.broadcast %cst_14 : f32 to vector<8x1xf32>
    %37 = arith.mulf %35, %36 : vector<8x1xf32>
    %38 = vector.extract_strided_slice %34 {offsets = [8, 0], sizes = [8, 1], strides = [1, 1]} : vector<16x1xf32> to vector<8x1xf32>
    %cst_15 = arith.constant 0.0161290318 : f32
    %39 = vector.broadcast %cst_15 : f32 to vector<8x1xf32>
    %40 = arith.mulf %38, %39 : vector<8x1xf32>
    %41 = arith.mulf %37, %37 : vector<8x1xf32>
    %42 = arith.subf %40, %41 : vector<8x1xf32>
    %c1 = arith.constant 1 : index
    %c0_16 = arith.constant 0 : index
    %c0_17 = arith.constant 0 : index
    %43 = vector.load %arg5[%c1, %c0_16, %c0_17] : memref<2x16x1xf32, #tpu.memory_space<vmem>>, vector<1x16x1xf32>
    %44 = vector.shape_cast %43 : vector<1x16x1xf32> to vector<16x1xf32>
    %45 = vector.extract_strided_slice %44 {offsets = [0, 0], sizes = [8, 1], strides = [1, 1]} : vector<16x1xf32> to vector<8x1xf32>
    %cst_18 = arith.constant 9.99999974E-6 : f32
    %46 = vector.broadcast %cst_18 : f32 to vector<8x1xf32>
    %47 = arith.addf %42, %46 : vector<8x1xf32>
    %48 = math.rsqrt %47 : vector<8x1xf32>
    %49 = arith.mulf %45, %48 : vector<8x1xf32>
    %50 = vector.extract_strided_slice %44 {offsets = [8, 0], sizes = [8, 1], strides = [1, 1]} : vector<16x1xf32> to vector<8x1xf32>
    %51 = arith.mulf %37, %49 : vector<8x1xf32>
    %52 = arith.subf %50, %51 : vector<8x1xf32>
    %c0_19 = arith.constant 0 : index
    %c0_20 = arith.constant 0 : index
    %53 = vector.load %arg4[%c0_19, %c0_20] : memref<16x64xf32, #tpu.memory_space<vmem>>, vector<16x64xf32>
    %c0_21 = arith.constant 0 : index
    %c0_22 = arith.constant 0 : index
    %c0_23 = arith.constant 0 : index
    %54 = vector.load %arg2[%c0_21, %c0_22, %c0_23] : memref<1x64x1xf32, #tpu.memory_space<vmem>>, vector<1x64x1xf32>
    %55 = vector.shape_cast %54 : vector<1x64x1xf32> to vector<64x1xf32>
    %cst_24 = arith.constant dense<0.000000e+00> : vector<16x1xf32>
    %56 = tpu.matmul %53, %55, %cst_24 {dimension_numbers = #tpu.dot_dimension_numbers<[1], [0], [0], [1], [0, 0, 1, 1], [], []>} : vector<16x64xf32>, vector<64x1xf32>, vector<16x1xf32> -> vector<16x1xf32>
    %c0_25 = arith.constant 0 : index
    %c0_26 = arith.constant 0 : index
    %c0_27 = arith.constant 0 : index
    %57 = vector.load %arg5[%c0_25, %c0_26, %c0_27] : memref<2x16x1xf32, #tpu.memory_space<vmem>>, vector<1x16x1xf32>
    %58 = vector.shape_cast %57 : vector<1x16x1xf32> to vector<16x1xf32>
    %59 = arith.addf %56, %58 : vector<16x1xf32>
    %cst_28 = arith.constant 2.000000e+01 : f32
    %60 = vector.broadcast %cst_28 : f32 to vector<16x1xf32>
    %61 = arith.minimumf %59, %60 : vector<16x1xf32>
    %62 = math.exp %61 : vector<16x1xf32>
    %cst_29 = arith.constant 2.000000e+00 : f32
    %63 = vector.broadcast %cst_29 : f32 to vector<16x1xf32>
    %64 = arith.addf %62, %63 : vector<16x1xf32>
    %65 = arith.mulf %62, %64 : vector<16x1xf32>
    %cst_30 = arith.constant 2.000000e+01 : f32
    %66 = vector.broadcast %cst_30 : f32 to vector<16x1xf32>
    %67 = arith.cmpf ogt, %59, %66 : vector<16x1xf32>
    %cst_31 = arith.constant 2.000000e+00 : f32
    %68 = vector.broadcast %cst_31 : f32 to vector<16x1xf32>
    %69 = arith.addf %65, %68 : vector<16x1xf32>
    %70 = arith.divf %65, %69 : vector<16x1xf32>
    %71 = arith.mulf %59, %70 : vector<16x1xf32>
    %72 = arith.select %67, %59, %71 : vector<16x1xi1>, vector<16x1xf32>
    %73 = vector.extract_strided_slice %72 {offsets = [0, 0], sizes = [8, 1], strides = [1, 1]} : vector<16x1xf32> to vector<8x1xf32>
    %74 = vector.extract_strided_slice %72 {offsets = [8, 0], sizes = [8, 1], strides = [1, 1]} : vector<16x1xf32> to vector<8x1xf32>
    %75 = vector.broadcast %49 : vector<8x1xf32> to vector<8x31xf32>
    %76 = arith.mulf %32, %75 : vector<8x31xf32>
    %77 = vector.broadcast %52 : vector<8x1xf32> to vector<8x31xf32>
    %78 = arith.addf %76, %77 : vector<8x31xf32>
    %cst_32 = arith.constant 2.000000e+01 : f32
    %79 = vector.broadcast %cst_32 : f32 to vector<8x31xf32>
    %80 = arith.minimumf %78, %79 : vector<8x31xf32>
    %81 = math.exp %80 : vector<8x31xf32>
    %cst_33 = arith.constant 2.000000e+00 : f32
    %82 = vector.broadcast %cst_33 : f32 to vector<8x31xf32>
    %83 = arith.addf %81, %82 : vector<8x31xf32>
    %84 = arith.mulf %81, %83 : vector<8x31xf32>
    %cst_34 = arith.constant 2.000000e+01 : f32
    %85 = vector.broadcast %cst_34 : f32 to vector<8x31xf32>
    %86 = arith.cmpf ogt, %78, %85 : vector<8x31xf32>
    %cst_35 = arith.constant 2.000000e+00 : f32
    %87 = vector.broadcast %cst_35 : f32 to vector<8x31xf32>
    %88 = arith.addf %84, %87 : vector<8x31xf32>
    %89 = arith.divf %84, %88 : vector<8x31xf32>
    %90 = arith.mulf %78, %89 : vector<8x31xf32>
    %91 = arith.select %86, %78, %90 : vector<8x31xi1>, vector<8x31xf32>
    %92 = vector.broadcast %73 : vector<8x1xf32> to vector<8x31xf32>
    %93 = arith.mulf %91, %92 : vector<8x31xf32>
    %94 = vector.broadcast %74 : vector<8x1xf32> to vector<8x31xf32>
    %95 = arith.addf %93, %94 : vector<8x31xf32>
    %c0_36 = arith.constant 0 : index
    %c0_37 = arith.constant 0 : index
    %c0_38 = arith.constant 0 : index
    %96 = vector.load %arg7[%c0_36, %c0_37, %c0_38] : memref<1x8x31xf32, #tpu.memory_space<vmem>>, vector<1x8x31xf32>
    %97 = vector.shape_cast %96 : vector<1x8x31xf32> to vector<8x31xf32>
    %98 = vector.shape_cast %95 : vector<8x31xf32> to vector<1x8x31xf32>
    tpu.vector_store %arg7[%c0_36, %c0_37, %c0_38], %98 {strides = array<i32>} : memref<1x8x31xf32, #tpu.memory_space<vmem>>, vector<1x8x31xf32>,
    return
  }
  func.func @transform_0(%arg0: i32) -> (i32, i32, i32) {
    %c0_i32 = arith.constant 0 : i32
    %c0_i32_0 = arith.constant 0 : i32
    %c0_i32_1 = arith.constant 0 : i32
    return %arg0, %c0_i32, %c0_i32_0 : i32, i32, i32
  }
  func.func @transform_1(%arg0: i32) -> (i32, i32, i32) {
    %c0_i32 = arith.constant 0 : i32
    %c0_i32_0 = arith.constant 0 : i32
    %c0_i32_1 = arith.constant 0 : i32
    return %arg0, %c0_i32, %c0_i32_0 : i32, i32, i32
  }
  func.func @transform_2(%arg0: i32) -> (i32, i32) {
    %c0_i32 = arith.constant 0 : i32
    %c0_i32_0 = arith.constant 0 : i32
    %c0_i32_1 = arith.constant 0 : i32
    return %c0_i32, %c0_i32_0 : i32, i32
  }
  func.func @transform_3(%arg0: i32) -> (i32, i32) {
    %c0_i32 = arith.constant 0 : i32
    %c0_i32_0 = arith.constant 0 : i32
    %c0_i32_1 = arith.constant 0 : i32
    return %c0_i32, %c0_i32_0 : i32, i32
  }
  func.func @transform_4(%arg0: i32) -> (i32, i32, i32) {
    %c0_i32 = arith.constant 0 : i32
    %c0_i32_0 = arith.constant 0 : i32
    %c0_i32_1 = arith.constant 0 : i32
    %c0_i32_2 = arith.constant 0 : i32
    return %c0_i32, %c0_i32_0, %c0_i32_1 : i32, i32, i32
  }
  func.func @transform_5(%arg0: i32) -> (i32, i32, i32) {
    %c0_i32 = arith.constant 0 : i32
    %c0_i32_0 = arith.constant 0 : i32
    %c0_i32_1 = arith.constant 0 : i32
    %c0_i32_2 = arith.constant 0 : i32
    return %c0_i32, %c0_i32_0, %c0_i32_1 : i32, i32, i32
  }
  func.func @transform_6(%arg0: i32) -> (i32, i32, i32) {
    %c0_i32 = arith.constant 0 : i32
    %c0_i32_0 = arith.constant 0 : i32
    %c0_i32_1 = arith.constant 0 : i32
    return %arg0, %c0_i32, %c0_i32_0 : i32, i32, i32
  }
}

module attributes {stable_mosaic.version = 11 : i64} {
  func.func @_conv_stats_kernel(%arg0: i32, %arg1: memref<1x4x16xf32, #tpu.memory_space<vmem>>, %arg2: memref<24x4xf32, #tpu.memory_space<vmem>>, %arg3: memref<1x16x1xf32, #tpu.memory_space<vmem>>) attributes {dimension_semantics = [#tpu.dimension_semantics<parallel>], iteration_bounds = array<i64: 2>, scalar_prefetch = 0 : i64, scratch_operands = 0 : i64, tpu.core_type = #tpu.core_type<tc>, window_params = [{transform_indices = @transform_0, window_bounds = array<i64: 1, 4, 16>}, {pipeline_mode = #tpu.pipeline_mode<synchronous>, transform_indices = @transform_1, window_bounds = array<i64: 24, 4>}, {transform_indices = @transform_2, window_bounds = array<i64: 1, 16, 1>}]} {
    %c0 = arith.constant 0 : index
    %c0_0 = arith.constant 0 : index
    %c0_1 = arith.constant 0 : index
    %0 = vector.load %arg1[%c0, %c0_0, %c0_1] : memref<1x4x16xf32, #tpu.memory_space<vmem>>, vector<1x4x16xf32>
    %1 = vector.shape_cast %0 : vector<1x4x16xf32> to vector<4x16xf32>
    %c0_2 = arith.constant 0 : index
    %c0_3 = arith.constant 0 : index
    %2 = vector.load %arg2[%c0_2, %c0_3] : memref<24x4xf32, #tpu.memory_space<vmem>>, vector<24x4xf32>
    %cst = arith.constant dense<0.000000e+00> : vector<24x16xf32>
    %3 = tpu.matmul %2, %1, %cst {dimension_numbers = #tpu.dot_dimension_numbers<[1], [0], [0], [1], [0, 0, 1, 1], [], []>} : vector<24x4xf32>, vector<4x16xf32>, vector<24x16xf32> -> vector<24x16xf32>
    %4 = vector.extract_strided_slice %3 {offsets = [0, 0], sizes = [8, 16], strides = [1, 1]} : vector<24x16xf32> to vector<8x16xf32>
    %5 = vector.extract_strided_slice %3 {offsets = [8, 0], sizes = [8, 16], strides = [1, 1]} : vector<24x16xf32> to vector<8x16xf32>
    %6 = vector.extract_strided_slice %3 {offsets = [16, 0], sizes = [8, 16], strides = [1, 1]} : vector<24x16xf32> to vector<8x16xf32>
    %7 = tpu.iota {dimensions = array<i32: 0>} : vector<16x31xi32>
    %8 = tpu.iota {dimensions = array<i32: 1>} : vector<16x31xi32>
    %c2_i32 = arith.constant 2 : i32
    %9 = vector.broadcast %c2_i32 : i32 to vector<16x31xi32>
    %10 = arith.muli %9, %7 : vector<16x31xi32>
    %11 = arith.cmpi eq, %8, %10 : vector<16x31xi32>
    %12 = arith.extui %11 : vector<16x31xi1> to vector<16x31xi32>
    %13 = arith.sitofp %12 : vector<16x31xi32> to vector<16x31xf32>
    %c2_i32_4 = arith.constant 2 : i32
    %14 = vector.broadcast %c2_i32_4 : i32 to vector<16x31xi32>
    %15 = arith.muli %14, %7 : vector<16x31xi32>
    %c1_i32 = arith.constant 1 : i32
    %16 = vector.broadcast %c1_i32 : i32 to vector<16x31xi32>
    %17 = arith.addi %15, %16 : vector<16x31xi32>
    %18 = arith.cmpi eq, %8, %17 : vector<16x31xi32>
    %19 = arith.extui %18 : vector<16x31xi1> to vector<16x31xi32>
    %20 = arith.sitofp %19 : vector<16x31xi32> to vector<16x31xf32>
    %c2_i32_5 = arith.constant 2 : i32
    %21 = vector.broadcast %c2_i32_5 : i32 to vector<16x31xi32>
    %22 = arith.muli %21, %7 : vector<16x31xi32>
    %c1_i32_6 = arith.constant 1 : i32
    %23 = vector.broadcast %c1_i32_6 : i32 to vector<16x31xi32>
    %24 = arith.subi %22, %23 : vector<16x31xi32>
    %25 = arith.cmpi eq, %8, %24 : vector<16x31xi32>
    %26 = arith.extui %25 : vector<16x31xi1> to vector<16x31xi32>
    %27 = arith.sitofp %26 : vector<16x31xi32> to vector<16x31xf32>
    %cst_7 = arith.constant dense<0.000000e+00> : vector<8x31xf32>
    %28 = tpu.matmul %5, %13, %cst_7 {dimension_numbers = #tpu.dot_dimension_numbers<[1], [0], [0], [1], [0, 0, 1, 1], [], []>} : vector<8x16xf32>, vector<16x31xf32>, vector<8x31xf32> -> vector<8x31xf32>
    %cst_8 = arith.constant dense<0.000000e+00> : vector<8x31xf32>
    %29 = tpu.matmul %6, %20, %cst_8 {dimension_numbers = #tpu.dot_dimension_numbers<[1], [0], [0], [1], [0, 0, 1, 1], [], []>} : vector<8x16xf32>, vector<16x31xf32>, vector<8x31xf32> -> vector<8x31xf32>
    %30 = arith.addf %28, %29 : vector<8x31xf32>
    %cst_9 = arith.constant dense<0.000000e+00> : vector<8x31xf32>
    %31 = tpu.matmul %4, %27, %cst_9 {dimension_numbers = #tpu.dot_dimension_numbers<[1], [0], [0], [1], [0, 0, 1, 1], [], []>} : vector<8x16xf32>, vector<16x31xf32>, vector<8x31xf32> -> vector<8x31xf32>
    %32 = arith.addf %30, %31 : vector<8x31xf32>
    %cst_10 = arith.constant dense<0.000000e+00> : vector<8xf32>
    %33 = vector.multi_reduction <add>, %32, %cst_10 [1] : vector<8x31xf32> to vector<8xf32>
    %34 = vector.shape_cast %33 : vector<8xf32> to vector<8x1xf32>
    %35 = arith.mulf %32, %32 : vector<8x31xf32>
    %cst_11 = arith.constant dense<0.000000e+00> : vector<8xf32>
    %36 = vector.multi_reduction <add>, %35, %cst_11 [1] : vector<8x31xf32> to vector<8xf32>
    %37 = vector.shape_cast %36 : vector<8xf32> to vector<8x1xf32>
    %38 = tpu.concatenate %34, %37 in 0 : vector<8x1xf32>, vector<8x1xf32> -> vector<16x1xf32>
    %c0_12 = arith.constant 0 : index
    %c0_13 = arith.constant 0 : index
    %c0_14 = arith.constant 0 : index
    %39 = vector.load %arg3[%c0_12, %c0_13, %c0_14] : memref<1x16x1xf32, #tpu.memory_space<vmem>>, vector<1x16x1xf32>
    %40 = vector.shape_cast %39 : vector<1x16x1xf32> to vector<16x1xf32>
    %41 = vector.shape_cast %38 : vector<16x1xf32> to vector<1x16x1xf32>
    tpu.vector_store %arg3[%c0_12, %c0_13, %c0_14], %41 {strides = array<i32>} : memref<1x16x1xf32, #tpu.memory_space<vmem>>, vector<1x16x1xf32>,
    return
  }
  func.func @transform_0(%arg0: i32) -> (i32, i32, i32) {
    %c0_i32 = arith.constant 0 : i32
    %c0_i32_0 = arith.constant 0 : i32
    %c0_i32_1 = arith.constant 0 : i32
    return %arg0, %c0_i32, %c0_i32_0 : i32, i32, i32
  }
  func.func @transform_1(%arg0: i32) -> (i32, i32) {
    %c0_i32 = arith.constant 0 : i32
    %c0_i32_0 = arith.constant 0 : i32
    %c0_i32_1 = arith.constant 0 : i32
    return %c0_i32, %c0_i32_0 : i32, i32
  }
  func.func @transform_2(%arg0: i32) -> (i32, i32, i32) {
    %c0_i32 = arith.constant 0 : i32
    %c0_i32_0 = arith.constant 0 : i32
    %c0_i32_1 = arith.constant 0 : i32
    return %arg0, %c0_i32, %c0_i32_0 : i32, i32, i32
  }
}

</mosaic_0001>

<bundles_post_ra>
// kernel: conditional_conv1d_block.2
= control target key start
LH: loop header
LB: loop body
LE: loop exit
PB: predicated region body
PF: predicated region fallthrough
CT: control target
= control target key end

     0   :  { %s417_s9 = smov 0   ;;  %s447_s0 = inlined_call_operand.vmem [shape: f32[2,4,16], index: 0, kind: input, shape index: {}]   ;;  %s448_s1 = inlined_call_operand.vmem [shape: f32[24,4], index: 1, kind: input, shape index: {}]   ;;  %s449_s2 = inlined_call_operand.vmem [shape: f32[2,16,1], index: 2, kind: output, shape index: {}]  }
   0x1 LB: > { %s351_s10 = sadd.s32 4294967295, %s399_s9   ;;  %p355_p0 = scmp.ge.s32.totalorder %s399_s9, 1  ;;  %s399_s9 = sphi %s417_s9, %s12_s9  }
   0x2   : > { %p111_p1 = scmp.lt.s32.totalorder %s399_s9, 3 }
   0x4   : > { %p112_p2 = pnand %p355_p0, %p111_p1 }
   0x5   : > { %p132_p3 = scmp.lt.s32.totalorder (!%p112_p2), %s351_s10, 1 }
   0x6   : > { %115 = sbr.rel (%p112_p2) target bundleno = 412 (0x19c), region = 28 }
   0xb   : > { %v185_v0 = vlaneseq  ;;  %s451_s10 = smov (!%p132_p3, %s351_s10), 1  ;;  %vm155_vm0 = vcmask 1043456   ;;  %v142_v3 = vld [vmem:[%s448_s1] sm:$0xff]  ;;  %vm145_vm1 = vcmask 31744   ;;  %v144_v4 = vld [vmem:[%s448_s1 + $0x10] sm:$0xff]  ;;  %v401_v9 = vmov 1.0  }
   0xc   : > { %s356_s11 = sshll.u32 %s451_s10, 2  ;;  %v143_v10 = vld [vmem:[%s448_s1 + $0x8] sm:$0xff]  ;;  %vm214_vm8 = vcmask 130048   ;;  %vm285_vm9 = vcmask 252928   ;;  %s382_s21 = sshll.u32 %s451_s10, 4  ;;  %vm293_vm10 = vcmask 7168  }
   0xd   : > { %v186_v1 = vshrl.u32 %v185_v0, 7  ;;  %s135_s14 = scalar_lea.vmem %s447_s0, %s356_s11  ;;  %v189_v6 = vand.u32 127, %v185_v0  ;;  %s140_s24 = scalar_lea.vmem %s449_s2, %s382_s21 }
   0xe   : > { %v141_v5 = vld [vmem:[%s135_s14] sm:$0xf] }
   0xf   : > { %v187_v2 = vadd.s32 8, %v186_v1  ;;  %359 = vmatpush.msk.msra.mxu0 %vm155_vm0, %v141_v5  ;;  %383 = vmatpush.msk.msra.mxu1 %vm155_vm0, %v141_v5  ;;  %v190_v11 = vmul.u32 2, %v186_v1 }
  0x10   : > { %360 = vmatmul.msk.f32.vlgmr.msra.gmra.mxu0 %vm145_vm1, %v142_v3  ;;  %362 = vmatmul.msk.f32.vlgmr.msra.gmra.mxu1 %vm145_vm1, %v144_v4 }
  0x11   : > { %v191_v7 = vmul.u32 2, %v187_v2  ;;  %v367_v12 = vadd.s32 4294967295, %v190_v11  ;;  %vm192_vm6 = vcmp.eq.s32.totalorder %v189_v6, %v190_v11  ;;  %v198_v14 = vadd.s32 1, %v190_v11 }
  0x13   : > { %v368_v8 = vadd.s32 4294967295, %v191_v7  ;;  %vm208_vm3 = vcmp.eq.s32.totalorder %v189_v6, %v367_v12  ;;  %vm193_vm4 = vcmp.eq.s32.totalorder %v189_v6, %v191_v7  ;;  %v199_v13 = vadd.s32 1, %v191_v7 }
  0x14   : > { %374 = vmatpush.msk.msra.mxu2 %vm193_vm4, %v401_v9  ;;  %vm200_vm7 = vcmp.eq.s32.totalorder %v189_v6, %v198_v14 }
  0x15   : > { %vm209_vm2 = vcmp.eq.s32.totalorder %v189_v6, %v368_v8  ;;  %vm201_vm5 = vcmp.eq.s32.totalorder %v189_v6, %v199_v13 }
  0x16   : > { %377 = vmatpush.msk.msra.mxu3 %vm209_vm2, %v401_v9  ;;  %371 = vmatpush.msk.msrb.mxu1 %vm201_vm5, %v401_v9 }
  0x17   : > { %375 = vmatpush.msk.msra.mxu2 %vm192_vm6, %v401_v9 }
  0x18   : > { %361 = vmatmul.msk.f32.gmra.mxu0 %vm145_vm1, %v143_v10  ;;  %378 = vmatpush.msk.msra.mxu3 %vm208_vm3, %v401_v9 }
  0x19   : > { %372 = vmatpush.msk.msrb.mxu1 %vm200_vm7, %v401_v9 }
  0x8d   : > { %v176_v15 = vpop.f32.mrf.mxu0  ;;  %v182_v16 = vpop.f32.mrf.mxu1 }
  0x8e   : > { %379 = vmatmul.msk.f32.vlgmr.msra.gmra.mxu3 %vm214_vm8, %v176_v15  ;;  %373 = vmatmul.msk.f32.vlgmr.msrb.gmra.mxu1 %vm214_vm8, %v182_v16 }
  0x95   : > { %v179_v17 = vpop.f32.mrf.mxu0 }
  0x96   : > { %376 = vmatmul.msk.f32.vlgmr.msra.gmra.mxu2 %vm214_vm8, %v179_v17 }
 0x10b   : > { %v235_v18 = vpop.f32.mrf.mxu1 }
 0x111   : > { %v281_v21 = vpop.f32.mrf.mxu3 }
 0x119   : > { %v258_v19 = vpop.f32.mrf.mxu2 }
 0x11a   : > { %v259_v20 = vadd.f32 %v258_v19, %v235_v18 }
 0x11c   : > { %v284_v22 = vadd.f32 %v281_v21, %v259_v20 }
 0x11e   : > { %v286_v23 = vsel %vm285_vm9, %v284_v22, 0.0  ;;  %v289_v24 = vmul.f32 %v284_v22, %v284_v22 }
 0x11f   : > { %287 = vadd.xlane.f32.xlu0 %v286_v23 }
 0x120   : > { %v290_v25 = vsel %vm285_vm9, %v289_v24, 0.0 }
 0x127   : > { %291 = vadd.xlane.f32.xlu0 %v290_v25 }
 0x192   : > { %v288_v26 = vpop.xlane.xlu0 %287 }
 0x193   : > { %294 = vst.msk [vmem:[%s140_s24] sm:$0xff] %vm293_vm10, %v288_v26 }
 0x19a   : > { %v292_v27 = vpop.xlane.xlu0 %291 }
 0x19b   : > { %295 = vst.msk [vmem:[%s140_s24 + $0x8] sm:$0xff] %vm293_vm10, %v292_v27 }
 0x19c PF: > { %s12_s9 = sadd.s32 1, %s399_s9  }
 0x19d   : > { %p9_p4 = scmp.ge.s32.totalorder %s12_s9, 4  }
 0x19f   :  { %11 = sbr.rel (!%p9_p4) target bundleno = 1 (0x1), region = 58 }

// kernel: conditional_conv1d_block.3
= control target key start
LH: loop header
LB: loop body
LE: loop exit
PB: predicated region body
PF: predicated region fallthrough
CT: control target
= control target key end

     0   :  { %11 = vsyncpa [#allocation3], 0  ;;  %s1017_s0 = inlined_call_operand.vmem [shape: f32[2,4,16], index: 0, kind: input, shape index: {}]   ;;  %s1018_s1 = inlined_call_operand.vmem [shape: f32[2,64,1], index: 1, kind: input, shape index: {}]   ;;  %s1019_s2 = inlined_call_operand.vmem [shape: f32[24,4], index: 2, kind: input, shape index: {}]   ;;  %s1020_s3 = inlined_call_operand.vmem [shape: f32[16,64], index: 3, kind: input, shape index: {}]   ;;  %s1021_s4 = inlined_call_operand.vmem [shape: f32[2,16,1], index: 4, kind: input, shape index: {}]   ;;  %s1022_s5 = inlined_call_operand.vmem [shape: f32[2,16,1], index: 5, kind: input, shape index: {}]   ;;  %s1023_s6 = inlined_call_operand.hbm [shape: f32[2,8,31], index: 6, kind: output, shape index: {}]  }
   0x1   :  { %13 = vsyncpa [#allocation3 + $0x1], 0  ;;  %s874_s21 = smov 0   ;;  %s876_s22 = smov 0  }
   0x2   :  { %s878_s23 = smov 0   ;;  %s880_s24 = smov 0  }
   0x3 LB: > { %s895_s25 = sadd.s32 4294967295, %s835_s24   ;;  %s670_s26 = sadd.s32 4294967294, %s835_s24   ;;  %s835_s24 = sphi %s880_s24, %s1029_s24   ;;  %s831_s23 = sphi %s878_s23, %s1028_s23   ;;  %s827_s22 = sphi %s876_s22, %s1027_s22   ;;  %s823_s21 = sphi %s874_s21, %s1026_s21  }
   0x4   : > { %s899_s27 = sadd.s32 1, %s835_s24   ;;  %s162_s28 = sadd.s32 1, %s831_s23 }
   0x5   : > { %s159_s29 = ssub.s32 %s835_s24, %s899_s27  ;;  %p172_p0 = scmp.ne.s32.totalorder %s831_s23, %s827_s22 }
   0x6   : > { %p160_p1 = scmp.eq.s32.totalorder %s159_s29, 0  ;;  %p173_p2 = scmp.eq.s32.totalorder %s895_s25, 1 }
   0x7   : > { %p178_p3 = scmp.ne.s32.totalorder %s827_s22, %s823_s21  ;;  %p179_p4 = scmp.eq.s32.totalorder %s670_s26, 1 }
   0x8   : > { %s910_s30 = scalar_select %p160_p1, %s831_s23, %s162_s28  }
   0x9   : > { %p912_p5 = por %p173_p2, %p172_p0  ;;  %p916_p6 = por %p179_p4, %p178_p3 }
   0xa   : > { %p673_p7 = scmp.ge.s32.totalorder %s835_s24, 1  ;;  %p224_p8 = scmp.lt.s32.totalorder %s835_s24, 3 }
   0xc   : > { %p225_p9 = pnand %p673_p7, %p224_p8 }
   0xd   : > { %p258_p10 = scmp.lt.s32.totalorder (!%p225_p9), %s895_s25, 1  ;;  %s704_s16 = sshll.u32 (!%p225_p9), %s895_s25, 3 }
   0xe   : > { %228 = sbr.rel (%p225_p9) target bundleno = 460 (0x1cc), region = 44  ;;  %s594_s19 = scalar_lea.hbm (!%p225_p9), %s1023_s6, %s704_s16 }
   0xf   : > { %s598_s28 = sshll.u32 (!%p225_p9), %s594_s19, 4  ;;  %s793_s12 = scalar_lea.hbm (!%p225_p9), %s1023_s6, 16  ;;  %s599_s28 = int_to_ptr.hbm [resolvable:$true] %s598_s28 }
  0x13   : > { %v311_v0 = vlaneseq  ;;  %s259_s9 = scalar_select %p258_p10, %s895_s25, 1  ;;  %vm281_vm0 = vcmask 1043456   ;;  %v268_v4 = vld [vmem:[%s1019_s2] sm:$0xff]  ;;  %vm271_vm1 = vcmask 31744   ;;  %v837_v10 = vmov 1.0   ;;  %v269_v13 = vld [vmem:[%s1019_s2 + $0x8] sm:$0xff] }
  0x14   : > { %v443_v17 = vld [vmem:[%s1020_s3] sm:$0xff]  ;;  %vm455_vm3 = vcmask 523264   ;;  %v270_v18 = vld [vmem:[%s1019_s2 + $0x10] sm:$0xff]  ;;  %vm415_vm5 = vcmask 7168   ;;  %v412_v24 = vld [vmem:[%s1022_s5 + $0x8] sm:$0xff]  ;;  %v838_v41 = vmov 0  }
  0x15   : > { %v312_v1 = vshrl.u32 %v311_v0, 7  ;;  %s675_s10 = sshll.u32 %s259_s9, 2  ;;  %s707_s11 = sshll.u32 %s259_s9, 6  ;;  %v924_v3 = vand.u32 127, %v311_v0  ;;  %v411_v20 = vld [vmem:[%s1022_s5] sm:$0xff]  ;;  %v413_v21 = vld [vmem:[%s1022_s5 + $0x10] sm:$0xff]  ;;  %757 = vset.pattern.permute.xlu0 %v838_v41  ;;  %758 = vset.pattern.permute.xlu1 %v838_v41 }
  0x16   : > { %s261_s14 = scalar_lea.vmem %s1017_s0, %s675_s10  ;;  %s266_s17 = scalar_lea.vmem %s1018_s1, %s707_s11  ;;  %v416_v22 = vsel %vm415_vm5, %v411_v20, 0.0  ;;  %v417_v23 = vsel %vm415_vm5, %v413_v21, 0.0  ;;  %v414_v25 = vld [vmem:[%s1022_s5 + $0x18] sm:$0xff]  ;;  %v419_v28 = vsel %vm415_vm5, %v412_v24, 0.0  ;;  %v699_v46 = vld [vmem:[%s1021_s4 + $0x10] sm:$0xff]  ;;  %vm340_vm13 = vcmask 130048  }
  0x17   : > { %v313_v2 = vadd.s32 8, %v312_v1  ;;  %v267_v5 = vld [vmem:[%s261_s14] sm:$0xf]  ;;  %v452_v6 = vld [vmem:[%s266_s17 + $0x38] sm:$0xff]  ;;  %v451_v7 = vld [vmem:[%s266_s17 + $0x30] sm:$0xff]  ;;  %v316_v19 = vmul.u32 2, %v312_v1  ;;  %v418_v26 = vadd.f32 %v417_v23, %v416_v22 }
  0x18   : > { %678 = vmatpush.msk.msra.mxu0 %vm281_vm0, %v267_v5  ;;  %470 = vmatpush.msra.mxu1 %v452_v6  ;;  %v450_v9 = vld [vmem:[%s266_s17 + $0x28] sm:$0xff]  ;;  %v449_v11 = vld [vmem:[%s266_s17 + $0x20] sm:$0xff]  ;;  %v448_v12 = vld [vmem:[%s266_s17 + $0x18] sm:$0xff]  ;;  %v420_v29 = vsel %vm415_vm5, %v414_v25, 0.0  ;;  %s255_s14 = sand.u32 1, %s827_s22   ;;  %s787_s9 = sshra.s32 %s599_s28, 4  ;;  %s788_s9 = int_to_ptr.hbm [resolvable:$true] %s787_s9 }
  0x19   : > { %v317_v8 = vmul.u32 2, %v313_v2  ;;  %679 = vmatmul.msk.f32.vlgmr.msra.gmra.mxu0 %vm271_vm1, %v268_v4  ;;  %v447_v14 = vld [vmem:[%s266_s17 + $0x10] sm:$0xff]  ;;  %v446_v15 = vld [vmem:[%s266_s17 + $0x8] sm:$0xff]  ;;  %v445_v16 = vld [vmem:[%s266_s17] sm:$0xff]  ;;  %vm318_vm4 = vcmp.eq.s32.totalorder %v924_v3, %v316_v19  ;;  %v421_v30 = vadd.f32 %v420_v29, %v419_v28  ;;  %v422_v31 = vmul.f32 0.016129032, %v418_v26  ;;  %p794_p0 = scmp.lt.s32.totalorder %s788_s9, %s1023_s6 }
  0x1a   : > { %471 = vmatpush.msra.mxu1 %v451_v7  ;;  %v324_v34 = vadd.s32 1, %v316_v19  ;;  %v686_v38 = vadd.s32 4294967295, %v316_v19  ;;  %v700_v51 = vld [vmem:[%s1021_s4 + $0x18] sm:$0xff]  ;;  %v453_v54 = vld [vmem:[%s1021_s4] sm:$0xff]  ;;  %v444_v55 = vld [vmem:[%s1020_s3 + $0x8] sm:$0xff]  ;;  %s674_s15 = sshll.u32 %s255_s14, 3 }
  0x1b   : > { %vm319_vm2 = vcmp.eq.s32.totalorder %v924_v3, %v317_v8  ;;  %v325_v27 = vadd.s32 1, %v317_v8  ;;  %v423_v32 = vmul.f32 0.016129032, %v421_v30  ;;  %v424_v33 = vmul.f32 %v422_v31, %v422_v31  ;;  %s257_s20 = scalar_lea.vmem [#allocation2], %s674_s15  ;;  %s584_s29 = scalar_lea.sflag [#allocation3], %s255_s14 }
  0x1c   : > { %693 = vmatpush.msk.msra.mxu2 %vm319_vm2, %v837_v10  ;;  %472 = vmatpush.msra.mxu1 %v450_v9  ;;  %vm326_vm7 = vcmp.eq.s32.totalorder %v924_v3, %v324_v34  ;;  %v687_v37 = vadd.s32 4294967295, %v317_v8  ;;  %vm334_vm9 = vcmp.eq.s32.totalorder %v924_v3, %v686_v38  ;;  %s596_s26 = sshll.u32 %s257_s20, 4  ;;  %s789_s25 = scalar_lea.hbm %s788_s9, 8  ;;  %s597_s26 = int_to_ptr.vmem [resolvable:$true] %s596_s26 }
  0x1d   : > { %vm327_vm6 = vcmp.eq.s32.totalorder %v924_v3, %v325_v27  ;;  %v425_v35 = vsub.f32 %v423_v32, %v424_v33  ;;  %p790_p11 = scmp.ne.s32.totalorder %s788_s9, %s789_s25  ;;  %p795_p1 = scmp.lt.s32.totalorder %s793_s12, %s789_s25 }
  0x1e   : > { %473 = vmatpush.msra.mxu1 %v449_v11  ;;  %694 = vmatpush.msk.msra.mxu2 %vm318_vm4, %v837_v10  ;;  %vm335_vm8 = vcmp.eq.s32.totalorder %v924_v3, %v687_v37 }
  0x1f   : > { %690 = vmatpush.msk.msra.mxu3 %vm327_vm6, %v837_v10  ;;  %v429_v36 = vadd.f32 1e-05, %v425_v35  ;;  %p791_p12 = pnand %p790_p11, %p912_p5  ;;  %p796_p2 = por %p795_p1, %p794_p0 }
  0x20   : > { %474 = vmatpush.msra.mxu1 %v448_v12  ;;  %708 = vmatpush.msrb.mxu2 %v452_v6 }
  0x21   : > { %680 = vmatmul.msk.f32.gmra.mxu0 %vm271_vm1, %v269_v13  ;;  %691 = vmatpush.msk.msra.mxu3 %vm326_vm7, %v837_v10  ;;  %759 = vrsqrt.f32 %v429_v36  ;;  %vm436_vm10 = vweird.f32 %v429_v36  ;;  %p792_p13 = pneg %p791_p12 }
  0x22   : > { %475 = vmatpush.msra.mxu1 %v447_v14  ;;  %709 = vmatpush.msrb.mxu2 %v451_v7 }
  0x23   : > { %696 = vmatpush.msk.msrb.mxu3 %vm335_vm8, %v837_v10  ;;  %p797_p3 = pnand %p796_p2, %p792_p13 }
  0x24   : > { %476 = vmatpush.msra.mxu1 %v446_v15  ;;  %710 = vmatpush.msrb.mxu2 %v450_v9 }
  0x25   : > { %697 = vmatpush.msk.msrb.mxu3 %vm334_vm9, %v837_v10 }
  0x26   : > { %477 = vmatpush.msra.mxu1 %v445_v16  ;;  %711 = vmatpush.msrb.mxu2 %v449_v11 }
  0x27   : > { %701 = vmatmul.msk.f32.vlgmr.msra.gmra.mxu1 %vm455_vm3, %v443_v17  ;;  %v760_v39 = vpop.eup %759 }
  0x28   : > { %712 = vmatpush.msrb.mxu2 %v448_v12  ;;  %v431_v40 = vmul.f32 %v760_v39, %v429_v36  ;;  %vm437_vm11 = vweird.f32 %v760_v39 }
  0x29   : > { %681 = vmatmul.msk.f32.gmra.mxu0 %vm271_vm1, %v270_v18  ;;  %vm438_vm12 = vmor %vm436_vm10, %vm437_vm11 }
  0x2a   : > { %713 = vmatpush.msrb.mxu2 %v447_v14  ;;  %v432_v42 = vmul.f32 %v760_v39, %v431_v40 }
  0x2c   : > { %714 = vmatpush.msrb.mxu2 %v446_v15  ;;  %v433_v43 = vmul.f32 0.5, %v432_v42  ;;  %v454_v15 = vld [vmem:[%s1021_s4 + $0x8] sm:$0xff] }
  0x2e   : > { %715 = vmatpush.msrb.mxu2 %v445_v16  ;;  %v434_v44 = vsub.f32 1.5, %v433_v43 }
  0x30   : > { %v435_v47 = vmul.f32 %v760_v39, %v434_v44 }
  0x32   : > { %v439_v48 = vsel %vm438_vm12, %v760_v39, %v435_v47 }
  0x33   : > { %v440_v49 = vmul.f32 %v699_v46, %v439_v48 }
  0x35   : > { %535 = vperm.xlu0 %757, %v440_v49   ;;  %v441_v50 = vmul.f32 %v440_v49, %v422_v31 }
  0x37   : > { %v442_v53 = vsub.f32 %v700_v51, %v441_v50 }
  0x3d   : > { %541 = vperm.xlu0 %757, %v442_v53  }
  0x96   : > { %v302_v45 = vpop.f32.mrf.mxu0 }
  0x9e   : > { %v305_v52 = vpop.f32.mrf.mxu0 }
  0x9f   : > { %695 = vmatmul.msk.f32.vlgmr.msra.gmra.mxu2 %vm340_vm13, %v305_v52 }
  0xa4   : > { %v479_v56 = vpop.f32.mrf.mxu1 }
  0xa5   : > { %v480_v57 = vadd.f32 %v479_v56, %v453_v54 }
  0xa6   : > { %v308_v58 = vpop.f32.mrf.mxu0 }
  0xa7   : > { %692 = vmatmul.msk.f32.vlgmr.msra.gmra.mxu3 %vm340_vm13, %v308_v58  ;;  %702 = vmatmul.msk.f32.vlgmr.msrb.gmra.mxu2 %vm455_vm3, %v444_v55  ;;  %v485_v59 = vmin.f32 %v480_v57, 20.0  ;;  %vm495_vm2 = vcmp.gt.f32.partialorder %v480_v57, 20.0  ;;  %v536_v38 = vpop.permute.xlu0 %535 }
  0xa9   : > { %v487_v60 = vmul.f32 1.442695, %v485_v59 }
  0xab   : > { %761 = vpow2.f32 %v487_v60 }
  0xaf   : > { %698 = vmatmul.msk.f32.vlgmr.msrb.gmra.mxu3 %vm340_vm13, %v302_v45  ;;  %v542_v43 = vpop.permute.xlu0 %541  ;;  %vm581_vm13 = vcmask 252928  }
  0xb1   : > { %v762_v61 = vpop.eup %761 }
  0xb2   : > { %v491_v62 = vadd.f32 2.0, %v762_v61 }
  0xb4   : > { %v493_v63 = vmul.f32 %v762_v61, %v491_v62 }
  0xb6   : > { %v497_v0 = vadd.f32 2.0, %v493_v63 }
  0xb8   : > { %763 = vrcp.f32 %v497_v0  ;;  %v510_v3 = vand.u32 2147483648, %v497_v0  ;;  %vm504_vm14 = vweird.f32 %v497_v0  ;;  %v508_v5 = vand.u32 2147483647, %v497_v0 }
  0xba   : > { %v511_v7 = vor.u32 1.1754944e-38, %v510_v3  ;;  %vm509_vm1 = vcmp.eq.f32.partialorder %v508_v5, 8.507059e+37 }
  0xbe   : > { %v764_v1 = vpop.eup %763 }
  0xbf   : > { %v500_v2 = vmul.f32 %v764_v1, %v497_v0  ;;  %vm505_vm15 = vweird.f32 %v764_v1 }
  0xc0   : > { %vm506_vm0 = vmor %vm504_vm14, %vm505_vm15 }
  0xc1   : > { %v501_v4 = vsub.f32 1.0, %v500_v2 }
  0xc3   : > { %v502_v6 = vmul.f32 %v764_v1, %v501_v4 }
  0xc5   : > { %v503_v8 = vadd.f32 %v764_v1, %v502_v6 }
  0xc7   : > { %v507_v9 = vsel %vm506_vm0, %v764_v1, %v503_v8 }
  0xc8   : > { %v512_v10 = vsel %vm509_vm1, %v511_v7, %v507_v9 }
  0xc9   : > { %v513_v11 = vmul.f32 %v512_v10, %v493_v63 }
  0xcb   : > { %v529_v12 = vmul.f32 %v513_v11, %v480_v57 }
  0xcd   : > { %v531_v13 = vsel %vm495_vm2, %v480_v57, %v529_v12 }
  0xce   : > { %571 = vperm.xlu1 %758, %v531_v13  }
 0x122   : > { %v384_v14 = vpop.f32.mrf.mxu2 }
 0x12a   : > { %v482_v16 = vpop.f32.mrf.mxu2  ;;  %v361_v37 = vpop.f32.mrf.mxu3 }
 0x12b   : > { %v483_v17 = vadd.f32 %v482_v16, %v454_v15  ;;  %v385_v40 = vadd.f32 %v384_v14, %v361_v37 }
 0x12d   : > { %v486_v18 = vmin.f32 %v483_v17, 20.0  ;;  %vm496_vm7 = vcmp.gt.f32.partialorder %v483_v17, 20.0 }
 0x12f   : > { %v489_v19 = vmul.f32 1.442695, %v486_v18 }
 0x131   : > { %765 = vpow2.f32 %v489_v19 }
 0x132   : > { %v407_v39 = vpop.f32.mrf.mxu3 }
 0x133   : > { %v410_v41 = vadd.f32 %v407_v39, %v385_v40 }
 0x135   : > { %v538_v42 = vmul.f32 %v536_v38, %v410_v41 }
 0x137   : > { %v766_v20 = vpop.eup %765  ;;  %v544_v44 = vadd.f32 %v542_v43, %v538_v42 }
 0x138   : > { %v492_v21 = vadd.f32 2.0, %v766_v20 }
 0x139   : > { %v545_v45 = vmin.f32 %v544_v44, 20.0  ;;  %vm550_vm12 = vcmp.gt.f32.partialorder %v544_v44, 20.0 }
 0x13a   : > { %v494_v22 = vmul.f32 %v766_v20, %v492_v21 }
 0x13b   : > { %v546_v46 = vmul.f32 1.442695, %v545_v45 }
 0x13c   : > { %v498_v23 = vadd.f32 2.0, %v494_v22 }
 0x13e   : > { %767 = vrcp.f32 %v498_v23  ;;  %v525_v27 = vand.u32 2147483648, %v498_v23  ;;  %v523_v29 = vand.u32 2147483647, %v498_v23  ;;  %vm519_vm4 = vweird.f32 %v498_v23 }
 0x13f   : > { %769 = vpow2.f32 %v546_v46 }
 0x140   : > { %v526_v31 = vor.u32 1.1754944e-38, %v525_v27  ;;  %vm524_vm6 = vcmp.eq.f32.partialorder %v523_v29, 8.507059e+37  ;;  %v572_v62 = vpop.permute.xlu1 %571 }
 0x144   : > { %v768_v24 = vpop.eup %767 }
 0x145   : > { %v515_v25 = vmul.f32 %v768_v24, %v498_v23  ;;  %vm520_vm3 = vweird.f32 %v768_v24  ;;  %v770_v47 = vpop.eup %769 }
 0x146   : > { %vm521_vm5 = vmor %vm519_vm4, %vm520_vm3  ;;  %v548_v48 = vadd.f32 2.0, %v770_v47 }
 0x147   : > { %v516_v26 = vsub.f32 1.0, %v515_v25 }
 0x148   : > { %v549_v49 = vmul.f32 %v770_v47, %v548_v48 }
 0x149   : > { %v517_v28 = vmul.f32 %v768_v24, %v516_v26 }
 0x14a   : > { %v551_v50 = vadd.f32 2.0, %v549_v49 }
 0x14b   : > { %v518_v30 = vadd.f32 %v768_v24, %v517_v28 }
 0x14c   : > { %771 = vrcp.f32 %v551_v50  ;;  %v563_v56 = vand.u32 2147483648, %v551_v50  ;;  %vm557_vm9 = vweird.f32 %v551_v50  ;;  %v561_v57 = vand.u32 2147483647, %v551_v50 }
 0x14d   : > { %v522_v32 = vsel %vm521_vm5, %v768_v24, %v518_v30 }
 0x14e   : > { %v527_v33 = vsel %vm524_vm6, %v526_v31, %v522_v32  ;;  %v564_v59 = vor.u32 1.1754944e-38, %v563_v56  ;;  %vm562_vm11 = vcmp.eq.f32.partialorder %v561_v57, 8.507059e+37 }
 0x14f   : > { %v528_v34 = vmul.f32 %v527_v33, %v494_v22 }
 0x151   : > { %v530_v35 = vmul.f32 %v528_v34, %v483_v17 }
 0x152   : > { %v772_v51 = vpop.eup %771 }
 0x153   : > { %v532_v36 = vsel %vm496_vm7, %v483_v17, %v530_v35  ;;  %v553_v52 = vmul.f32 %v772_v51, %v551_v50  ;;  %vm558_vm8 = vweird.f32 %v772_v51 }
 0x154   : > { %577 = vperm.xlu1 %758, %v532_v36   ;;  %vm559_vm10 = vmor %vm557_vm9, %vm558_vm8 }
 0x155   : > { %v554_v53 = vsub.f32 1.0, %v553_v52 }
 0x157   : > { %v555_v54 = vmul.f32 %v772_v51, %v554_v53 }
 0x159   : > { %v556_v55 = vadd.f32 %v772_v51, %v555_v54 }
 0x15b   : > { %v560_v58 = vsel %vm559_vm10, %v772_v51, %v556_v55 }
 0x15c   : > { %v565_v60 = vsel %vm562_vm11, %v564_v59, %v560_v58 }
 0x15d   : > { %v566_v61 = vmul.f32 %v565_v60, %v549_v49 }
 0x15f   : > { %v567_v63 = vmul.f32 %v566_v61, %v544_v44 }
 0x161   : > { %v568_v0 = vsel %vm550_vm12, %v544_v44, %v567_v63 }
 0x162   : > { %v574_v1 = vmul.f32 %v572_v62, %v568_v0 }
 0x1c6   : > { %v578_v2 = vpop.permute.xlu1 %577 }
 0x1c7   : > { %v580_v3 = vadd.f32 %v578_v2, %v574_v1 }
 0x1c9   : > { %582 = vst.msk [vmem:[%s257_s20] sm:$0xff] %vm581_vm13, %v580_v3 }
 0x1ca   : > { %800 = shalt.err (!%p797_p3)
}
 0x1cb   : > { %716 = dma.vmem_to_hbm [thread:$0]  (%p912_p5), %s597_s26, 128, %s599_s28, %s584_s29  }
 0x1cc PF: > { %p722_p4 = scmp.ge.s32.totalorder %s835_s24, 2  ;;  %s610_s14 = sand.u32 1, %s823_s21  }
 0x1cd   : > { %s611_s16 = scalar_lea.sflag [#allocation3], %s610_s14 }
 0x1ce   : > { %p719_p7 = pnand %p722_p4, %p916_p6 }
 0x1d0   : > { %p720_p8 = pneg %p719_p7 }
 0x1d2   : > { %818 = dma.done.wait (%p720_p8), %s611_s16, 128  }
 0x1d3   : > { %820 = vsyncadd (%p720_p8), %s611_s16, 4294967168  ;;  %p16_p9 = scmp.ge.s32.totalorder %s899_s27, 4   ;;  %s1026_s21 = smov %s827_s22 }
 0x1d4   : > { %s1027_s22 = smov %s831_s23  ;;  %s1028_s23 = smov %s910_s30 }
 0x1d5   : > { %s1029_s24 = smov %s899_s27  ;;  %18 = sbr.rel (!%p16_p9) target bundleno = 3 (0x3), region = 83 }
 0x1da   :  { %617 = vsyncpa [#allocation3], 1 }
 0x1db   :  { %619 = vsyncpa [#allocation3 + $0x1], 1 }

</bundles_post_ra>
